<compile_context>
chip_gen: v7x
topology: tpu7x:2x2x1
jax: 0.10.0
libtpu: 0.0.40
codegen_flags: <defaults>
</compile_context>

<pallas_src>
import functools

import jax
import jax.numpy as jnp
from jax.experimental import pallas as pl
from jax.experimental.pallas import tpu as pltpu

LANE = 128  # lane width of the packed parameter slab


def _round_up(n, m):
    return (n + m - 1) // m * m


def mlp_kernel(layout, out_size, x_ref, p_ref, o_ref):
    """layout: static tuple of (w_row_off, in_size, b_row_off) per layer.

    p_ref is one packed lane-dense VMEM slab of shape (rows, 128):
      rows [w_off, w_off + in_size)  -> folded layer weight, already (in, 128)
      row  b_off                     -> folded layer bias (1, 128)
    Each hidden layer computes t = tanh(t_prev @ V + c); the sigmoid affine
    (0.5*tanh(.)+0.5) has been folded into (V, c) at pack time.
    """
    h = x_ref[...].astype(jnp.float32)
    for w_off, in_size, b_off in layout:              # static unroll over layers
        w = p_ref[pl.ds(w_off, in_size), :]           # (in_size, 128), unmasked lanes
        b = p_ref[pl.ds(b_off, 1), :]                 # (1, 128), broadcast add
        h = jnp.tanh(
            jnp.dot(h[:, :in_size], w, preferred_element_type=jnp.float32) + b
        )

    # F.softmax(x) on a 2-D tensor defaults to dim=1 (feature axis).
    # Output of the last sigmoid is 0.5*t + 0.5; softmax is shift-invariant,
    # so only the 0.5 scale survives.  Exact divide (cheap at (batch,1)).
    logits = 0.5 * h[:, :out_size]
    m = jnp.max(logits, axis=-1, keepdims=True)
    e = jnp.exp(logits - m)
    s = jnp.sum(e, axis=-1, keepdims=True)
    o_ref[...] = (e / s).astype(o_ref.dtype)


def pack_params(weights, biases, lane_width=LANE):
    """Pack torch-style params into ONE lane-dense slab (done once, offline).

    weights[i]: (out, in) like nn.Linear.weight ; biases[i]: (out,).
    Weights are pre-transposed to (in, out), the sigmoid affine is folded in,
    the out dim is zero-padded to `lane_width` lanes, and each layer block
    (weight rows + 1 bias row) is padded to a multiple of 8 rows so every
    static pl.ds slice starts on a sublane-tile boundary.

    Returns (slab, layout) with layout a static tuple of
    (weight_row_offset, in_size, bias_row_offset) per layer.
    """
    blocks, layout, off = [], [], 0
    for i, (w, b) in enumerate(zip(weights, biases)):
        out_size, in_size = w.shape
        wt = jnp.transpose(w).astype(jnp.float32)       # (in, out)
        bf = b.astype(jnp.float32)
        if i == 0:
            # 0.5*z0 = x @ (0.5*W0^T) + 0.5*b0
            v, c = 0.5 * wt, 0.5 * bf
        else:
            # prev output is 0.5*t + 0.5  =>  0.5*z = t @ (0.25*W^T) + (0.5*b + 0.25*colsum(W^T))
            v, c = 0.25 * wt, 0.5 * bf + 0.25 * jnp.sum(wt, axis=0)

        rows_pad = _round_up(in_size + 1, 8)
        blk = jnp.zeros((rows_pad, lane_width), jnp.float32)
        blk = blk.at[:in_size, :out_size].set(v)
        blk = blk.at[in_size, :out_size].set(c)
        blocks.append(blk)
        layout.append((off, in_size, off + in_size))
        off += rows_pad
    slab = jnp.concatenate(blocks, axis=0)
    return slab, tuple(layout)


@functools.partial(jax.jit, static_argnames=("layout", "out_size"))
def network_forward(x, param_slab, layout, out_size):
    """x: (batch, input_size); param_slab/layout from pack_params (built once)."""
    vmem = pl.BlockSpec(memory_space=pltpu.MemorySpace.VMEM)
    return pl.pallas_call(
        functools.partial(mlp_kernel, layout, out_size),
        out_shape=jax.ShapeDtypeStruct((x.shape[0], out_size), x.dtype),
        in_specs=[vmem, vmem],
        out_specs=vmem,
    )(x, param_slab)


def init_params(key, input_size, output_size, num_layers):
    """Deterministic nn.Linear-style init: U(-1/sqrt(fan_in), 1/sqrt(fan_in))."""
    weights, biases = [], []
    in_sz = input_size
    for _ in range(num_layers):
        key, kw, kb = jax.random.split(key, 3)
        bound = 1.0 / float(in_sz) ** 0.5
        weights.append(
            jax.random.uniform(kw, (output_size, in_sz), jnp.float32, -bound, bound)
        )
        biases.append(
            jax.random.uniform(kb, (output_size,), jnp.float32, -bound, bound)
        )
        in_sz = output_size
    return weights, biases


def reference_forward(x, weights, biases):
    h = x
    for w, b in zip(weights, biases):
        h = jax.nn.sigmoid(h @ w.T + b)
    return jax.nn.softmax(h, axis=-1)


if __name__ == "__main__":
    key = jax.random.PRNGKey(0)
    key, kx = jax.random.split(key)

    batch, input_size, output_size, num_layers = 8, 32, 16, 3
    x = jax.random.normal(kx, (batch, input_size), dtype=jnp.float32)
    weights, biases = init_params(key, input_size, output_size, num_layers)

    # One-time packing: folded, pre-transposed, lane-dense parameter slab.
    param_slab, layout = pack_params(weights, biases)

    out = network_forward(x, param_slab, layout, output_size)
    out = jax.block_until_ready(out)

    ref = reference_forward(x, weights, biases)
    assert out.shape == (batch, output_size)
    assert jnp.allclose(out, ref, atol=5e-5, rtol=5e-5), "mismatch vs JAX reference"

    print("KERNEL_OK")
</pallas_src>

<mosaic_0001>
module attributes {stable_mosaic.version = 11 : i64} {
  func.func @mlp_kernel(%arg0: memref<8x32xf32, #tpu.memory_space<vmem>>, %arg1: memref<88x128xf32, #tpu.memory_space<vmem>>, %arg2: memref<8x16xf32, #tpu.memory_space<vmem>>) attributes {dimension_semantics = [], scalar_prefetch = 0 : i64, scratch_operands = 0 : i64, tpu.core_type = #tpu.core_type<tc>} {
    %c0 = arith.constant 0 : index
    %c0_0 = arith.constant 0 : index
    %0 = vector.load %arg0[%c0, %c0_0] : memref<8x32xf32, #tpu.memory_space<vmem>>, vector<8x32xf32>
    %c0_1 = arith.constant 0 : index
    %c0_2 = arith.constant 0 : index
    %1 = vector.load %arg1[%c0_1, %c0_2] : memref<88x128xf32, #tpu.memory_space<vmem>>, vector<32x128xf32>
    %c32 = arith.constant 32 : index
    %c0_3 = arith.constant 0 : index
    %2 = vector.load %arg1[%c32, %c0_3] : memref<88x128xf32, #tpu.memory_space<vmem>>, vector<1x128xf32>
    %cst = arith.constant dense<0.000000e+00> : vector<8x128xf32>
    %3 = tpu.matmul %0, %1, %cst {dimension_numbers = #tpu.dot_dimension_numbers<[1], [0], [0], [1], [0, 0, 1, 1], [], []>} : vector<8x32xf32>, vector<32x128xf32>, vector<8x128xf32> -> vector<8x128xf32>
    %4 = vector.broadcast %2 : vector<1x128xf32> to vector<8x128xf32>
    %5 = arith.addf %3, %4 : vector<8x128xf32>
    %6 = math.tanh %5 : vector<8x128xf32>
    %c40 = arith.constant 40 : index
    %c0_4 = arith.constant 0 : index
    %7 = vector.load %arg1[%c40, %c0_4] : memref<88x128xf32, #tpu.memory_space<vmem>>, vector<16x128xf32>
    %c56 = arith.constant 56 : index
    %c0_5 = arith.constant 0 : index
    %8 = vector.load %arg1[%c56, %c0_5] : memref<88x128xf32, #tpu.memory_space<vmem>>, vector<1x128xf32>
    %9 = vector.extract_strided_slice %6 {offsets = [0, 0], sizes = [8, 16], strides = [1, 1]} : vector<8x128xf32> to vector<8x16xf32>
    %cst_6 = arith.constant dense<0.000000e+00> : vector<8x128xf32>
    %10 = tpu.matmul %9, %7, %cst_6 {dimension_numbers = #tpu.dot_dimension_numbers<[1], [0], [0], [1], [0, 0, 1, 1], [], []>} : vector<8x16xf32>, vector<16x128xf32>, vector<8x128xf32> -> vector<8x128xf32>
    %11 = vector.broadcast %8 : vector<1x128xf32> to vector<8x128xf32>
    %12 = arith.addf %10, %11 : vector<8x128xf32>
    %13 = math.tanh %12 : vector<8x128xf32>
    %c64 = arith.constant 64 : index
    %c0_7 = arith.constant 0 : index
    %14 = vector.load %arg1[%c64, %c0_7] : memref<88x128xf32, #tpu.memory_space<vmem>>, vector<16x128xf32>
    %c80 = arith.constant 80 : index
    %c0_8 = arith.constant 0 : index
    %15 = vector.load %arg1[%c80, %c0_8] : memref<88x128xf32, #tpu.memory_space<vmem>>, vector<1x128xf32>
    %16 = vector.extract_strided_slice %13 {offsets = [0, 0], sizes = [8, 16], strides = [1, 1]} : vector<8x128xf32> to vector<8x16xf32>
    %cst_9 = arith.constant dense<0.000000e+00> : vector<8x128xf32>
    %17 = tpu.matmul %16, %14, %cst_9 {dimension_numbers = #tpu.dot_dimension_numbers<[1], [0], [0], [1], [0, 0, 1, 1], [], []>} : vector<8x16xf32>, vector<16x128xf32>, vector<8x128xf32> -> vector<8x128xf32>
    %18 = vector.broadcast %15 : vector<1x128xf32> to vector<8x128xf32>
    %19 = arith.addf %17, %18 : vector<8x128xf32>
    %20 = math.tanh %19 : vector<8x128xf32>
    %21 = vector.extract_strided_slice %20 {offsets = [0, 0], sizes = [8, 16], strides = [1, 1]} : vector<8x128xf32> to vector<8x16xf32>
    %cst_10 = arith.constant 5.000000e-01 : f32
    %22 = vector.broadcast %cst_10 : f32 to vector<8x16xf32>
    %23 = arith.mulf %22, %21 : vector<8x16xf32>
    %cst_11 = arith.constant dense<0xFF800000> : vector<8xf32>
    %24 = vector.multi_reduction <maximumf>, %23, %cst_11 [1] : vector<8x16xf32> to vector<8xf32>
    %25 = vector.shape_cast %24 : vector<8xf32> to vector<8x1xf32>
    %26 = vector.broadcast %25 : vector<8x1xf32> to vector<8x16xf32>
    %27 = arith.subf %23, %26 : vector<8x16xf32>
    %28 = math.exp %27 : vector<8x16xf32>
    %cst_12 = arith.constant dense<0.000000e+00> : vector<8xf32>
    %29 = vector.multi_reduction <add>, %28, %cst_12 [1] : vector<8x16xf32> to vector<8xf32>
    %30 = vector.shape_cast %29 : vector<8xf32> to vector<8x1xf32>
    %31 = vector.broadcast %30 : vector<8x1xf32> to vector<8x16xf32>
    %32 = arith.divf %28, %31 : vector<8x16xf32>
    %c0_13 = arith.constant 0 : index
    %c0_14 = arith.constant 0 : index
    %33 = vector.load %arg2[%c0_13, %c0_14] : memref<8x16xf32, #tpu.memory_space<vmem>>, vector<8x16xf32>
    tpu.vector_store %arg2[%c0_13, %c0_14], %32 {strides = array<i32>} : memref<8x16xf32, #tpu.memory_space<vmem>>, vector<8x16xf32>,
    return
  }
}

</mosaic_0001>

<bundles_post_ra>
// kernel: network_forward.1
= control target key start
LH: loop header
LB: loop body
LE: loop exit
PB: predicated region body
PF: predicated region fallthrough
CT: control target
= control target key end

     0   :  { %7 = vsyncpa [#allocation3], 0  ;;  %s533_s0 = inlined_call_operand.hbm [shape: f32[8,32], index: 0, kind: input, shape index: {}]   ;;  %s534_s1 = inlined_call_operand.hbm [shape: f32[88,128], index: 1, kind: input, shape index: {}]   ;;  %s535_s2 = inlined_call_operand.hbm [shape: f32[8,16], index: 2, kind: output, shape index: {}]  }
   0x1   :  { %8 = vsyncpa [#allocation6], 0 }
   0x2   :  { %9 = vsyncpa [#allocation4], 0  ;;  %s459_s9 = smov [#allocation2]   ;;  %s460_s11 = smov [#allocation5]  }
   0x3   :  { %s16_s10 = sshll.u32 %s459_s9, 4  ;;  %s25_s12 = sshll.u32 %s460_s11, 4  ;;  %s17_s10 = int_to_ptr.vmem [resolvable:$true] %s16_s10  ;;  %s482_s12 = int_to_ptr.vmem [resolvable:$true] %s25_s12 }
   0x4   :  { %s387_s15 = scalar_lea.hbm %s533_s0, 128 }
   0x5   :  { %p388_p0 = scmp.ne.s32.totalorder %s533_s0, %s387_s15  ;;  %p391_p1 = scmp.lt.u32.totalorder %s387_s15, %s533_s0 }
   0x7   :  { %p393_p2 = pnand %p391_p1, %p388_p0 }
   0x9   :  { %396 = shalt.err (!%p393_p2)
}
   0xa   :  { %s397_s20 = scalar_lea.vmem %s17_s10, 128  ;;  %p402_p4 = scmp.lt.s32.totalorder %s17_s10, %s17_s10 }
   0xb   :  { %p398_p3 = scmp.ne.s32.totalorder %s17_s10, %s397_s20  ;;  %p403_p5 = scmp.lt.s32.totalorder %s397_s20, %s397_s20 }
   0xd   :  { %p404_p6 = por %p403_p5, %p402_p4 }
   0xf   :  { %p405_p7 = pnand %p404_p6, %p398_p3 }
  0x11   :  { %408 = shalt.err (!%p405_p7)
}
  0x12   :  { %19 = dma.hbm_to_vmem [thread:$0]  %s533_s0, 128, %s17_s10, [#allocation3]  }
  0x13   :  { %s409_s25 = scalar_lea.hbm %s534_s1, 1408 }
  0x14   :  { %p410_p8 = scmp.ne.s32.totalorder %s534_s1, %s409_s25  ;;  %p413_p9 = scmp.lt.u32.totalorder %s409_s25, %s534_s1 }
  0x16   :  { %p415_p10 = pnand %p413_p9, %p410_p8 }
  0x18   :  { %418 = shalt.err (!%p415_p10)
}
  0x19   :  { %s419_s30 = scalar_lea.vmem %s482_s12, 1408  ;;  %p424_p12 = scmp.lt.s32.totalorder %s482_s12, %s482_s12 }
  0x1a   :  { %p420_p11 = scmp.ne.s32.totalorder %s482_s12, %s419_s30  ;;  %p425_p13 = scmp.lt.s32.totalorder %s419_s30, %s419_s30 }
  0x1c   :  { %p426_p0 = por %p425_p13, %p424_p12 }
  0x1e   :  { %p427_p1 = pnand %p426_p0, %p420_p11 }
  0x20   :  { %430 = shalt.err (!%p427_p1)
}
  0x21   :  { %s461_s0 = smov 128   ;;  %s462_s3 = smov 8  }
  0x22   :  { %31 = dma.hbm_to_vmem [thread:$0]  %s534_s1, 1408, %s482_s12, [#allocation6], %s461_s0, %s461_s0, %s462_s3  }
  0x23   :  { %453 = dma.done.wait [#allocation3], 128  }
  0x24   :  { %454 = vsyncadd [#allocation3], 4294967168 }
  0x25   :  { %455 = dma.done.wait [#allocation6], 1408  }
  0x26   :  { %456 = vsyncadd [#allocation6], 4294965888  ;;  %v463_v0 = vmov 0.0|0.0   ;;  %vm464_vm0 = vmmov 0   ;;  %v465_v1 = vmov 0.0   ;;  %v39_v2 = vld [vmem:[#allocation5] sm:$0xff] }
  0x27   :  { %357 = vmatprep.subr.bf16.mxu0 %v463_v0  ;;  %340 = vmatprep.mubr.msk.f32.mxu0 %vm464_vm0, %v465_v1  ;;  %v40_v3 = vld [vmem:[#allocation5 + $0x8] sm:$0xff]  ;;  %v41_v4 = vld [vmem:[#allocation5 + $0x10] sm:$0xff]  ;;  %v42_v6 = vld [vmem:[#allocation5 + $0x18] sm:$0xff]  ;;  %vm48_vm1 = vcmask 261120   ;;  %vm130_vm2 = vcmask 130048   ;;  %s466_s1 = smov [#allocation7]  }
  0x28   :  { %363 = vmatprep.subr.bf16.mxu1 %v463_v0  ;;  %347 = vmatprep.mubr.msk.f32.mxu1 %vm464_vm0, %v465_v1  ;;  %v358_v5 = vpack.c.bf16 %v40_v3, %v39_v2  ;;  %v361_v7 = vpack.c.bf16 %v42_v6, %v41_v4  ;;  %v38_v8 = vld [vmem:[#allocation2] sm:$0xff]  ;;  %v123_v9 = vld [vmem:[#allocation5 + $0x28] sm:$0xff]  ;;  %v124_v10 = vld [vmem:[#allocation5 + $0x30] sm:$0xff]  ;;  %s305_s6 = sshll.u32 %s466_s1, 4  ;;  %s306_s6 = int_to_ptr.vmem [resolvable:$true] %s305_s6 }
  0x29   :  { %v364_v11 = vpack.c.bf16 %v124_v10, %v123_v9  ;;  %v315_v12 = vld [vmem:[#allocation5 + $0x20] ss:$0 sm:$0xff]  ;;  %v206_v18 = vld [vmem:[#allocation5 + $0x48] sm:$0xff]  ;;  %v317_v20 = vld [vmem:[#allocation5 + $0x38] ss:$0 sm:$0xff]  ;;  %s431_s7 = scalar_lea.vmem %s306_s6, 128  ;;  %p436_p3 = scmp.lt.s32.totalorder %s306_s6, %s306_s6 }
  0x2a   :  { %359 = vmatpush3.bf16.msra.mxu0 %v358_v5  ;;  %v205_v17 = vld [vmem:[#allocation5 + $0x40] sm:$0xff]  ;;  %v319_v25 = vld [vmem:[#allocation5 + $0x50] ss:$0 sm:$0xff]  ;;  %p432_p2 = scmp.ne.s32.totalorder %s306_s6, %s431_s7  ;;  %p437_p4 = scmp.lt.s32.totalorder %s431_s7, %s431_s7 }
  0x2b   :  { %360 = vmatprep.subr.bf16.mxu0 %v463_v0  ;;  %365 = vmatpush3.bf16.msra.mxu1 %v364_v11  ;;  %v367_v19 = vpack.c.bf16 %v206_v18, %v205_v17 }
  0x2c   :  { %366 = vmatprep.subr.bf16.mxu1 %v463_v0  ;;  %p438_p5 = por %p437_p4, %p436_p3 }
  0x2e   :  { %362 = vmatpush3.bf16.msra.mxu0 %v361_v7  ;;  %p439_p6 = pnand %p438_p5, %p432_p2 }
  0x31   :  { %341 = vmatmul.mubr.msk.f32.vlgmr.msra.gmra.mrb[0].mxu0 %vm48_vm1, %v38_v8 }
 0x104   :  { %v118_v13 = vpop.f32.mrb[0].mxu0 }
 0x105   :  { %v119_v14 = vadd.f32 %v315_v12, %v118_v13  ;;  %v342_v15 = vpop.f32.mrb[1].mxu0 }
 0x107   :  { %377 = vtanh.f32 %v119_v14 }
 0x111   :  { %v378_v16 = vpop.eup %377 }
 0x112   :  { %348 = vmatmul.mubr.msk.f32.vlgmr.msra.gmra.mrb[0].mxu1 %vm130_vm2, %v378_v16 }
 0x113   :  { %354 = vmatprep.mubr.msk.f32.mxu1 %vm464_vm0, %v465_v1  ;;  %368 = vmatpush3.bf16.msra.mxu1 %v367_v19 }
 0x1e5   :  { %v200_v21 = vpop.f32.mrb[0].mxu1 }
 0x1e6   :  { %v201_v22 = vadd.f32 %v317_v20, %v200_v21  ;;  %v349_v23 = vpop.f32.mrb[1].mxu1 }
 0x1e8   :  { %379 = vtanh.f32 %v201_v22 }
 0x1f2   :  { %v380_v24 = vpop.eup %379 }
 0x1f3   :  { %355 = vmatmul.mubr.msk.f32.vlgmr.msra.gmra.mrb[2].mxu1 %vm130_vm2, %v380_v24 }
 0x2c6   :  { %v281_v26 = vpop.f32.mrb[2].mxu1 }
 0x2c7   :  { %v282_v27 = vadd.f32 %v319_v25, %v281_v26  ;;  %v356_v28 = vpop.f32.mrb[3].mxu1 }
 0x2c9   :  { %381 = vtanh.f32 %v282_v27 }
 0x2d3   :  { %v382_v29 = vpop.eup %381 }
 0x2d4   :  { %v286_v30 = vmul.f32 0.5, %v382_v29 }
 0x2d6   :  { %v287_v31 = vsel %vm130_vm2, %v286_v30, -inf }
 0x2d7   :  { %288 = vmax.xlane.f32.xlu0 %v287_v31 }
 0x364   :  { %v289_v32 = vpop.xlane.xlu0 %288 }
 0x365   :  { %v290_v33 = vsub.f32 %v286_v30, %v289_v32 }
 0x367   :  { %v291_v34 = vmul.f32 1.442695, %v290_v33 }
 0x369   :  { %383 = vpow2.f32 %v291_v34 }
 0x373   :  { %v384_v35 = vpop.eup %383 }
 0x374   :  { %v293_v36 = vsel %vm130_vm2, %v384_v35, 0.0 }
 0x375   :  { %294 = vadd.xlane.f32.xlu0 %v293_v36 }
 0x402   :  { %v295_v37 = vpop.xlane.xlu0 %294 }
 0x403   :  { %385 = vrcp.f32 %v295_v37 }
 0x40d   :  { %v386_v38 = vpop.eup %385 }
 0x40e   :  { %v297_v39 = vmul.f32 %v386_v38, %v384_v35 }
 0x410   :  { %298 = vst.msk [vmem:[#allocation7] sm:$0xff] %vm130_vm2, %v297_v39 }
 0x411   :  { %442 = shalt.err (!%p439_p6)
}
 0x412   :  { %s443_s10 = scalar_lea.hbm %s535_s2, 128 }
 0x413   :  { %p444_p7 = scmp.ne.s32.totalorder %s535_s2, %s443_s10  ;;  %p447_p8 = scmp.lt.u32.totalorder %s443_s10, %s535_s2 }
 0x415   :  { %p449_p9 = pnand %p447_p8, %p444_p7 }
 0x417   :  { %452 = shalt.err (!%p449_p9)
}
 0x418   :  { %308 = dma.vmem_to_hbm [thread:$0]  %s306_s6, 128, %s535_s2, [#allocation4]  }
 0x419   :  { %457 = dma.done.wait [#allocation4], 128  }
 0x41a   :  { %458 = vsyncadd [#allocation4], 4294967168 }
 0x41b   :  { %312 = vsyncpa [#allocation3], 1 }
 0x41c   :  { %313 = vsyncpa [#allocation6], 1 }
 0x41d   :  { %314 = vsyncpa [#allocation4], 1 }

</bundles_post_ra>
